<compile_context>
chip_gen: v7x
topology: tpu7x:2x2x1
jax: 0.10.0
libtpu: 0.0.40
codegen_flags: <defaults>
</compile_context>

<pallas_src>
import functools
import numpy as np

import jax
import jax.numpy as jnp
from jax import lax
from jax.experimental import pallas as pl
from jax.experimental.pallas import tpu as pltpu


# --------------------------- VMEM limit heuristic -----------------------------

def _vmem_limit_bytes(working_set_bytes):
    """Scoped-VMEM limit: working set + headroom, capped at 90% of the chip."""
    try:
        cap = int(pltpu.get_tpu_info().vmem_capacity_bytes)
    except Exception:                       # older jax / emulated backend
        cap = 64 * 1024 * 1024              # conservative: v7x per-TC VMEM
    want = int(working_set_bytes) + (8 << 20)
    return int(min(max(want, 32 << 20), int(0.9 * cap)))


def _pick_time_chunk(T, B, H, budget_bytes=8 << 20):
    """Timesteps per gx chunk so 2 x [Tc*B, 4H] f32 scratch stays in budget."""
    per_t = 2 * B * 4 * H * 4
    tc = max(8, budget_bytes // max(per_t, 1))
    return int(min(T, tc))


# ----------------------------- Embedding gather ------------------------------

def _embed_gather_kernel(ids_ref, table_ref, out_ref, buf_ref, sem, *, C, W):
    # ids_ref:   SMEM [N_pad] int32  (scalar-prefetched token ids)
    # table_ref: HBM  [V, D]         (memory_space=pl.ANY, manual DMA)
    # out_ref:   VMEM [C, D]         this chunk's gathered rows
    # buf_ref:   VMEM [C, D]         gather landing buffer
    # sem:       DMA semaphores [W]  sliding window of outstanding row copies
    base = pl.program_id(0) * C

    def issue(j, _):
        # Retire the copy that used this semaphore slot W iterations ago.
        @pl.when(j >= W)
        def _():
            pltpu.make_async_copy(table_ref.at[pl.ds(0, 1), :],
                                  buf_ref.at[pl.ds(0, 1), :],
                                  sem.at[j % W]).wait()
        row = ids_ref[base + j]
        pltpu.make_async_copy(table_ref.at[pl.ds(row, 1), :],
                              buf_ref.at[pl.ds(j, 1), :],
                              sem.at[j % W]).start()
        return 0

    lax.fori_loop(0, C, issue, 0)

    def drain(j, _):
        pltpu.make_async_copy(table_ref.at[pl.ds(0, 1), :],
                              buf_ref.at[pl.ds(0, 1), :],
                              sem.at[j]).wait()
        return 0

    lax.fori_loop(0, W, drain, 0)
    out_ref[...] = buf_ref[...]


def embed(ids_flat, emb_table):
    """Chunked row-gather embedding lookup (table stays in HBM)."""
    # TODO(synk): for N >> 64K token ids, chunk the scalar-prefetch array too
    # (SMEM 1-D arrays pad to next_pow2(4N) bytes).
    N = int(ids_flat.shape[0])
    V, D = emb_table.shape
    C = N if N <= 512 else 512              # ~512 tokens per grid step
    n_chunks = -(-N // C)
    N_pad = n_chunks * C
    ids_p = jnp.zeros((N_pad,), jnp.int32).at[:N].set(ids_flat.astype(jnp.int32))
    W = min(8, C)

    kern = functools.partial(_embed_gather_kernel, C=C, W=W)
    out = pl.pallas_call(
        kern,
        out_shape=jax.ShapeDtypeStruct((N_pad, D), emb_table.dtype),
        grid_spec=pltpu.PrefetchScalarGridSpec(
            num_scalar_prefetch=1,
            grid=(n_chunks,),
            in_specs=[pl.BlockSpec(memory_space=pl.ANY)],
            out_specs=pl.BlockSpec((C, D), lambda c, ids: (c, 0)),
            scratch_shapes=[pltpu.VMEM((C, D), emb_table.dtype),
                            pltpu.SemaphoreType.DMA((W,))],
        ),
        compiler_params=pltpu.CompilerParams(
            dimension_semantics=("arbitrary",)),
    )(ids_p, emb_table)
    return out if N_pad == N else out[:N]


# ------------- Fused bidirectional LSTM layer (one pallas_call) --------------

def _bilstm_kernel(x_ref, wih_ref, whh_ref, b_ref, lens_ref, out_ref,
                   gxf_ref, gxb_ref, *, T, B, H, Tc, unroll):
    # x_ref:    [T*B, Hin]   time-major flattened activations (row = t*B + b)
    # wih_ref:  [2, Hin, 4H] input-projection weights (dir 0 = fwd, 1 = bwd)
    # whh_ref:  [2, H, 4H]   recurrent weights
    # b_ref:    [2, 1, 4H]   b_ih + b_hh per direction
    # lens_ref: [B, 1] int32 per-sequence lengths (0 for padded rows)
    # out_ref:  [T*B, 2H]    fwd hidden in lanes 0:H, bwd hidden in lanes H:2H
    # gxf/gxb:  VMEM [Tc*B, 4H] per-chunk precomputed input gates
    nchunks = T // Tc
    lens = lens_ref[...]                           # [B, 1] int32

    def gate_math(gates, c_prev):
        # PyTorch gate order: i, f, g, o
        i = jax.nn.sigmoid(gates[:, 0 * H:1 * H])
        f = jax.nn.sigmoid(gates[:, 1 * H:2 * H])
        g = jnp.tanh(gates[:, 2 * H:3 * H])
        o = jax.nn.sigmoid(gates[:, 3 * H:4 * H])
        c_new = f * c_prev + i * g
        h_new = o * jnp.tanh(c_new)
        return h_new, c_new

    def chunk_body(ci, carry):
        tf0 = ci * Tc                              # fwd timesteps [tf0, tf0+Tc)
        tb0 = T - (ci + 1) * Tc                    # bwd timesteps [tb0, tb0+Tc)
        rowf = pl.multiple_of(tf0 * B, B)
        rowb = pl.multiple_of(tb0 * B, B)
        # Hoisted input projection for this time chunk (one fused MXU matmul
        # per direction; bias folded in while the chunk is still in vregs).
        gxf_ref[...] = jnp.dot(x_ref[pl.ds(rowf, Tc * B), :], wih_ref[0],
                               preferred_element_type=jnp.float32) + b_ref[0]
        gxb_ref[...] = jnp.dot(x_ref[pl.ds(rowb, Tc * B), :], wih_ref[1],
                               preferred_element_type=jnp.float32) + b_ref[1]

        def step(s, c2):
            hf, cf, hb, cb = c2
            t_f = tf0 + s                          # forward walks t upward
            t_b = T - 1 - t_f                      # backward walks t downward
            rf = pl.multiple_of(s * B, B)
            rb = pl.multiple_of((Tc - 1 - s) * B, B)
            # Two independent recurrent matmuls issued back-to-back: the MXU
            # pipelines them, hiding most of the per-step latency even on a
            # single TensorCore.
            gf = gxf_ref[pl.ds(rf, B), :] + jnp.dot(
                hf, whh_ref[0], preferred_element_type=jnp.float32)
            gb = gxb_ref[pl.ds(rb, B), :] + jnp.dot(
                hb, whh_ref[1], preferred_element_type=jnp.float32)
            hf_new, cf_new = gate_math(gf, cf)
            hb_new, cb_new = gate_math(gb, cb)
            # packed-sequence semantics: only t < seq_len is processed; padded
            # positions keep the state untouched and emit zeros.
            vf = t_f < lens                        # [B, 1] bool
            vb = t_b < lens
            orf = pl.multiple_of(t_f * B, B)
            orb = pl.multiple_of(t_b * B, B)
            out_ref[pl.ds(orf, B), 0:H] = jnp.where(
                vf, hf_new, jnp.zeros_like(hf_new))
            out_ref[pl.ds(orb, B), H:2 * H] = jnp.where(
                vb, hb_new, jnp.zeros_like(hb_new))
            return (jnp.where(vf, hf_new, hf), jnp.where(vf, cf_new, cf),
                    jnp.where(vb, hb_new, hb), jnp.where(vb, cb_new, cb))

        return lax.fori_loop(0, Tc, step, c2 if False else carry,
                             unroll=unroll)

    z = jnp.zeros((B, H), jnp.float32)
    lax.fori_loop(0, nchunks, chunk_body, (z, z, z, z))


def bilstm_layer(x_flat, layer, lens_col, *, T, B, H, Tc):
    # x_flat: [T*B, Hin] ; returns [T*B, 2H] with columns [fwd | bwd].
    TB, Hin = x_flat.shape
    # Keep register pressure in check: both directions live in the loop body.
    unroll = True if Tc <= 8 else (4 if H <= 128 else 2)
    kern = functools.partial(_bilstm_kernel, T=T, B=B, H=H, Tc=Tc,
                             unroll=unroll)
    # Working-set estimate (x, weights, output double-buffered) + gx scratch.
    working = 4 * (2 * (TB * Hin + 2 * Hin * 4 * H + 2 * H * 4 * H
                        + 2 * 4 * H + B + TB * 2 * H)
                   + 2 * Tc * B * 4 * H)
    # TODO(synk): mark constant-index inputs pipeline_mode=pl.Buffered(1) to
    # drop the second buffer once the sandbox jax version is confirmed.
    return pl.pallas_call(
        kern,
        out_shape=jax.ShapeDtypeStruct((TB, 2 * H), jnp.float32),
        grid_spec=pltpu.PrefetchScalarGridSpec(
            num_scalar_prefetch=0,
            grid=(1,),
            in_specs=[
                pl.BlockSpec((TB, Hin), lambda i: (0, 0)),
                pl.BlockSpec((2, Hin, 4 * H), lambda i: (0, 0, 0)),
                pl.BlockSpec((2, H, 4 * H), lambda i: (0, 0, 0)),
                pl.BlockSpec((2, 1, 4 * H), lambda i: (0, 0, 0)),
                pl.BlockSpec((B, 1), lambda i: (0, 0)),
            ],
            out_specs=pl.BlockSpec((TB, 2 * H), lambda i: (0, 0)),
            scratch_shapes=[pltpu.VMEM((Tc * B, 4 * H), jnp.float32),
                            pltpu.VMEM((Tc * B, 4 * H), jnp.float32)],
        ),
        compiler_params=pltpu.CompilerParams(
            dimension_semantics=("arbitrary",),
            vmem_limit_bytes=_vmem_limit_bytes(working)),
    )(x_flat, layer["w_ih"], layer["w_hh"], layer["b"], lens_col)


# ------------------------------ Encoder module --------------------------------

def init_encoder_params(key, vocab_size, embedding_dim, enc_hid_dim, nlayers):
    params = {}
    key, k_emb = jax.random.split(key)
    # nn.Embedding default init: N(0, 1)
    params["embedding"] = jax.random.normal(
        k_emb, (vocab_size, embedding_dim), jnp.float32)
    H = enc_hid_dim
    bound = 1.0 / np.sqrt(H)
    layers = []
    for l in range(nlayers):
        hin = embedding_dim if l == 0 else 2 * H   # layer>0 input = [fwd, bwd]
        key, k1, k2, k3, k4 = jax.random.split(key, 5)
        layers.append({
            # stored pre-transposed: [2 dirs, Hin, 4H]
            "w_ih": jax.random.uniform(k1, (2, hin, 4 * H),
                                       jnp.float32, -bound, bound),
            "w_hh": jax.random.uniform(k2, (2, H, 4 * H),
                                       jnp.float32, -bound, bound),
            # b = b_ih + b_hh (they always appear summed)
            "b": (jax.random.uniform(k3, (2, 1, 4 * H),
                                     jnp.float32, -bound, bound)
                  + jax.random.uniform(k4, (2, 1, 4 * H),
                                       jnp.float32, -bound, bound)),
        })
    params["layers"] = layers
    return params


def encoder_forward(params, data, seq_lens):
    # data: [B, T] int32 token ids; seq_lens: host-side lengths, sorted
    # descending (pack_padded_sequence default enforce_sorted=True).
    seq_lens = np.asarray(seq_lens, dtype=np.int32)
    t_max = int(seq_lens.max())          # pad_packed_sequence: T = max(len)
    data = jnp.asarray(data)[:, :t_max]
    B, T = data.shape
    H = params["layers"][0]["w_hh"].shape[1]

    # Pad batch to a multiple of 8 sublanes (padded rows get length 0) and T
    # to a multiple of the gx time chunk (padded timesteps are fully masked).
    B_pad = ((B + 7) // 8) * 8
    Tc = _pick_time_chunk(T, B_pad, H)
    T_pad = ((T + Tc - 1) // Tc) * Tc

    data_p = jnp.zeros((B_pad, T_pad), jnp.int32).at[:B, :T].set(
        data.astype(jnp.int32))
    lens_col = jnp.zeros((B_pad, 1), jnp.int32).at[:B, 0].set(
        jnp.asarray(seq_lens))

    # Time-major flattened token order: row = t * B_pad + b.
    ids_tm = jnp.transpose(data_p, (1, 0)).reshape(T_pad * B_pad)
    x = embed(ids_tm, params["embedding"])          # [T_pad*B_pad, emb_dim]

    for layer in params["layers"]:
        x = bilstm_layer(x, layer, lens_col, T=T_pad, B=B_pad, H=H, Tc=Tc)
    # dropout=0.0 in the reference module -> no-op

    # [T_pad*B_pad, 2H] -> [B, T, 2H] batch-first; only a T<->B transpose.
    out = x.reshape(T_pad, B_pad, 2 * H)
    out = jnp.transpose(out[:T, :B], (1, 0, 2))
    return out


# ------------------------------ numpy reference -------------------------------

def reference_encoder(params, data, seq_lens):
    emb = np.asarray(params["embedding"])
    x = emb[np.asarray(data)].astype(np.float32)     # [B, T, D]
    lens = np.asarray(seq_lens)

    def sigmoid(z):
        return 1.0 / (1.0 + np.exp(-z))

    def run_dir(x, w_ih, w_hh, b, reverse):
        B, T, _ = x.shape
        H = w_hh.shape[0]
        out = np.zeros((B, T, H), np.float32)
        for bi in range(B):
            L = int(lens[bi])
            h = np.zeros(H, np.float32)
            c = np.zeros(H, np.float32)
            order = range(L - 1, -1, -1) if reverse else range(L)
            for t in order:
                gates = x[bi, t] @ w_ih + h @ w_hh + b
                i = sigmoid(gates[0:H]); f = sigmoid(gates[H:2 * H])
                g = np.tanh(gates[2 * H:3 * H]); o = sigmoid(gates[3 * H:4 * H])
                c = f * c + i * g
                h = o * np.tanh(c)
                out[bi, t] = h
        return out

    for layer in params["layers"]:
        w_ih = np.asarray(layer["w_ih"])   # [2, Hin, 4H]
        w_hh = np.asarray(layer["w_hh"])   # [2, H, 4H]
        b = np.asarray(layer["b"])         # [2, 1, 4H]
        outs = [run_dir(x, w_ih[d], w_hh[d], b[d, 0], reverse=(d == 1))
                for d in range(2)]
        x = np.concatenate(outs, axis=-1)
    return x


# ----------------------------------- main -------------------------------------

if __name__ == "__main__":
    vocab_size, embedding_dim, enc_hid_dim, nlayers = 64, 32, 32, 2
    B, T = 2, 8

    key = jax.random.PRNGKey(0)
    k_params, k_data = jax.random.split(key)
    params = init_encoder_params(k_params, vocab_size, embedding_dim,
                                 enc_hid_dim, nlayers)
    data = jax.random.randint(k_data, (B, T), 0, vocab_size, dtype=jnp.int32)
    seq_lens = [8, 5]  # descending, as pack_padded_sequence requires

    out = encoder_forward(params, data, seq_lens)
    out = jax.block_until_ready(out)

    assert out.shape == (B, max(seq_lens), 2 * enc_hid_dim), out.shape
    o = np.asarray(out)
    assert np.all(np.isfinite(o))
    # padded positions are zero (pad_packed_sequence semantics)
    for bi, L in enumerate(seq_lens):
        assert np.allclose(o[bi, L:, :], 0.0)

    ref = reference_encoder(params, data, seq_lens)
    assert np.allclose(o, ref, atol=2e-2, rtol=2e-2), np.abs(o - ref).max()

    print("KERNEL_OK")
</pallas_src>

<mosaic_0001>
module attributes {stable_mosaic.version = 11 : i64} {
  func.func @_embed_gather_kernel(%arg0: i32, %arg1: memref<64xi32, #tpu.memory_space<smem>>, %arg2: memref<64x32xf32, #tpu.memory_space<any>>, %arg3: memref<64x32xf32, #tpu.memory_space<vmem>>, %arg4: memref<64x32xf32, #tpu.memory_space<vmem>>, %arg5: memref<8x!tpu.dma_semaphore, #tpu.memory_space<semaphore_mem>>) attributes {dimension_semantics = [#tpu.dimension_semantics<arbitrary>], iteration_bounds = array<i64: 1>, scalar_prefetch = 1 : i64, scratch_operands = 2 : i64, tpu.core_type = #tpu.core_type<tc>, window_params = [{}, {transform_indices = @transform_1, window_bounds = array<i64: 64, 32>}]} {
    %c64_i32 = arith.constant 64 : i32
    %0 = arith.muli %arg0, %c64_i32 : i32
    %c0_i32 = arith.constant 0 : i32
    %c64_i32_0 = arith.constant 64 : i32
    %1 = arith.addi %c0_i32, %c64_i32_0 : i32
    %c1_i32 = arith.constant 1 : i32
    scf.for %arg6 = %c0_i32 to %1 step %c1_i32  : i32 {
      %c8_i32_8 = arith.constant 8 : i32
      %5 = arith.cmpi sge, %arg6, %c8_i32_8 : i32
      %6 = arith.extui %5 : i1 to i32
      %c0_i32_9 = arith.constant 0 : i32
      %7 = arith.cmpi ne, %6, %c0_i32_9 : i32
      scf.if %7 {
        %c8_i32_18 = arith.constant 8 : i32
        %c0_i32_19 = arith.constant 0 : i32
        %25 = arith.cmpi eq, %c8_i32_18, %c0_i32_19 : i32
        %c1_i32_20 = arith.constant 1 : i32
        %26 = arith.select %25, %c1_i32_20, %c8_i32_18 : i32
        %27 = arith.remsi %arg6, %26 : i32
        %c0_i32_21 = arith.constant 0 : i32
        %28 = arith.cmpi ne, %27, %c0_i32_21 : i32
        %c0_i32_22 = arith.constant 0 : i32
        %29 = arith.cmpi slt, %27, %c0_i32_22 : i32
        %c0_i32_23 = arith.constant 0 : i32
        %30 = arith.cmpi slt, %26, %c0_i32_23 : i32
        %31 = arith.xori %29, %30 : i1
        %32 = arith.andi %31, %28 : i1
        %33 = arith.addi %27, %26 : i32
        %34 = arith.select %32, %33, %27 : i32
        %c0_i32_24 = arith.constant 0 : i32
        %c0_i32_25 = arith.constant 0 : i32
        %35 = tpu.memref_slice %arg2[%c0_i32_24, %c0_i32_25] : memref<64x32xf32, #tpu.memory_space<any>> -> memref<1x32xf32, #tpu.memory_space<any>>
        %c0_i32_26 = arith.constant 0 : i32
        %c0_i32_27 = arith.constant 0 : i32
        %36 = tpu.memref_slice %arg4[%c0_i32_26, %c0_i32_27] : memref<64x32xf32, #tpu.memory_space<vmem>> -> memref<1x32xf32, #tpu.memory_space<vmem>>
        %37 = tpu.memref_slice %arg5[%34] : memref<8x!tpu.dma_semaphore, #tpu.memory_space<semaphore_mem>> -> memref<1x!tpu.dma_semaphore, #tpu.memory_space<semaphore_mem>>
        %38 = tpu.memref_squeeze %37 : memref<1x!tpu.dma_semaphore, #tpu.memory_space<semaphore_mem>> -> memref<!tpu.dma_semaphore, #tpu.memory_space<semaphore_mem>>
        tpu.wait_dma2 semaphore(%38 : memref<!tpu.dma_semaphore, #tpu.memory_space<semaphore_mem>>) src(%35 : memref<1x32xf32, #tpu.memory_space<any>>) dst(%36 : memref<1x32xf32, #tpu.memory_space<vmem>>)
      } else {
      }
      %8 = arith.addi %0, %arg6 : i32
      %9 = arith.index_cast %8 : i32 to index
      %10 = memref.load %arg1[%9] : memref<64xi32, #tpu.memory_space<smem>>
      %c8_i32_10 = arith.constant 8 : i32
      %c0_i32_11 = arith.constant 0 : i32
      %11 = arith.cmpi eq, %c8_i32_10, %c0_i32_11 : i32
      %c1_i32_12 = arith.constant 1 : i32
      %12 = arith.select %11, %c1_i32_12, %c8_i32_10 : i32
      %13 = arith.remsi %arg6, %12 : i32
      %c0_i32_13 = arith.constant 0 : i32
      %14 = arith.cmpi ne, %13, %c0_i32_13 : i32
      %c0_i32_14 = arith.constant 0 : i32
      %15 = arith.cmpi slt, %13, %c0_i32_14 : i32
      %c0_i32_15 = arith.constant 0 : i32
      %16 = arith.cmpi slt, %12, %c0_i32_15 : i32
      %17 = arith.xori %15, %16 : i1
      %18 = arith.andi %17, %14 : i1
      %19 = arith.addi %13, %12 : i32
      %20 = arith.select %18, %19, %13 : i32
      %c0_i32_16 = arith.constant 0 : i32
      %21 = tpu.memref_slice %arg2[%10, %c0_i32_16] : memref<64x32xf32, #tpu.memory_space<any>> -> memref<1x32xf32, #tpu.memory_space<any>>
      %c0_i32_17 = arith.constant 0 : i32
      %22 = tpu.memref_slice %arg4[%arg6, %c0_i32_17] : memref<64x32xf32, #tpu.memory_space<vmem>> -> memref<1x32xf32, #tpu.memory_space<vmem>>
      %23 = tpu.memref_slice %arg5[%20] : memref<8x!tpu.dma_semaphore, #tpu.memory_space<semaphore_mem>> -> memref<1x!tpu.dma_semaphore, #tpu.memory_space<semaphore_mem>>
      %24 = tpu.memref_squeeze %23 : memref<1x!tpu.dma_semaphore, #tpu.memory_space<semaphore_mem>> -> memref<!tpu.dma_semaphore, #tpu.memory_space<semaphore_mem>>
      tpu.enqueue_dma source(%21 : memref<1x32xf32, #tpu.memory_space<any>>) target(%22 : memref<1x32xf32, #tpu.memory_space<vmem>>) target_semaphore(%24 : memref<!tpu.dma_semaphore, #tpu.memory_space<semaphore_mem>>)
    }
    %c64_i32_1 = arith.constant 64 : i32
    %c0_i32_2 = arith.constant 0 : i32
    %c8_i32 = arith.constant 8 : i32
    %2 = arith.addi %c0_i32_2, %c8_i32 : i32
    %c1_i32_3 = arith.constant 1 : i32
    scf.for %arg6 = %c0_i32_2 to %2 step %c1_i32_3  : i32 {
      %c0_i32_8 = arith.constant 0 : i32
      %c0_i32_9 = arith.constant 0 : i32
      %5 = tpu.memref_slice %arg2[%c0_i32_8, %c0_i32_9] : memref<64x32xf32, #tpu.memory_space<any>> -> memref<1x32xf32, #tpu.memory_space<any>>
      %c0_i32_10 = arith.constant 0 : i32
      %c0_i32_11 = arith.constant 0 : i32
      %6 = tpu.memref_slice %arg4[%c0_i32_10, %c0_i32_11] : memref<64x32xf32, #tpu.memory_space<vmem>> -> memref<1x32xf32, #tpu.memory_space<vmem>>
      %7 = tpu.memref_slice %arg5[%arg6] : memref<8x!tpu.dma_semaphore, #tpu.memory_space<semaphore_mem>> -> memref<1x!tpu.dma_semaphore, #tpu.memory_space<semaphore_mem>>
      %8 = tpu.memref_squeeze %7 : memref<1x!tpu.dma_semaphore, #tpu.memory_space<semaphore_mem>> -> memref<!tpu.dma_semaphore, #tpu.memory_space<semaphore_mem>>
      tpu.wait_dma2 semaphore(%8 : memref<!tpu.dma_semaphore, #tpu.memory_space<semaphore_mem>>) src(%5 : memref<1x32xf32, #tpu.memory_space<any>>) dst(%6 : memref<1x32xf32, #tpu.memory_space<vmem>>)
    }
    %c8_i32_4 = arith.constant 8 : i32
    %c0 = arith.constant 0 : index
    %c0_5 = arith.constant 0 : index
    %3 = vector.load %arg4[%c0, %c0_5] : memref<64x32xf32, #tpu.memory_space<vmem>>, vector<64x32xf32>
    %c0_6 = arith.constant 0 : index
    %c0_7 = arith.constant 0 : index
    %4 = vector.load %arg3[%c0_6, %c0_7] : memref<64x32xf32, #tpu.memory_space<vmem>>, vector<64x32xf32>
    tpu.vector_store %arg3[%c0_6, %c0_7], %3 {strides = array<i32>} : memref<64x32xf32, #tpu.memory_space<vmem>>, vector<64x32xf32>,
    return
  }
  func.func @transform_1(%arg0: i32, %arg1: memref<64xi32, #tpu.memory_space<smem>>) -> (i32, i32) {
    %c0_i32 = arith.constant 0 : i32
    %c0_i32_0 = arith.constant 0 : i32
    return %arg0, %c0_i32 : i32, i32
  }
}

</mosaic_0001>

<bundles_post_ra>
// kernel: tpu_custom_call.1
= control target key start
LH: loop header
LB: loop body
LE: loop exit
PB: predicated region body
PF: predicated region fallthrough
CT: control target
= control target key end

     0   :  { %s329_s0 = inlined_call_operand.vmem [shape: s32[64], index: 0, kind: input, shape index: {}]   ;;  %s330_s1 = inlined_call_operand.vmem [shape: f32[64,32], index: 1, kind: input, shape index: {}]   ;;  %s331_s2 = inlined_call_operand.vmem [shape: f32[64,32], index: 2, kind: output, shape index: {}]  }
   0x1   :  { %s7_s11 = sshll.u32 %s329_s0, 4  ;;  %s8_s11 = int_to_ptr.vmem [resolvable:$true] %s7_s11 }
   0x2   :  { %s247_s12 = scalar_lea.vmem %s8_s11, 16  ;;  %p252_p1 = scmp.lt.s32.totalorder %s8_s11, %s8_s11 }
   0x3   :  { %p248_p0 = scmp.ne.s32.totalorder %s8_s11, %s247_s12  ;;  %p253_p2 = scmp.lt.s32.totalorder %s247_s12, %s247_s12 }
   0x5   :  { %p254_p3 = por %p253_p2, %p252_p1 }
   0x7   :  { %p255_p4 = pnand %p254_p3, %p248_p0 }
   0x9   :  { %258 = shalt.err (!%p255_p4)  }
   0xa   :  { %s283_s13 = smov [#allocation5]  }
   0xb   :  { %10 = dma.vmem_to_smem %s8_s11, 16, %s283_s13, [#allocation4] }
   0xc   :  { %267 = dma.done.wait [#allocation4], 16 }
   0xd   :  { %268 = vsyncadd [#allocation4], 4294967280 }
   0xe   :  { %12 = sfence }
   0xf   :  { %s275_s14 = smov 0  }
  0x10 LB: > { %p229_p5 = scmp.ge.s32.totalorder %s277_s14, 8  ;;  %p24_p6 = scmp.lt.s32.totalorder %s277_s14, 0  ;;  %s277_s14 = sphi %s275_s14, %s19_s14  }
  0x11   : > { %s25_s0 = ssub.s32 0, %s277_s14 }
  0x12   : > { %s213_s15 = smin.u32 %s277_s14, %s25_s0 }
  0x13   : > { %s27_s16 = sand.u32 7, %s213_s15  }
  0x14   : > { %s28_s17 = ssub.s32 0, %s27_s16 }
  0x15   : > { %s333_s17 = smov (!%p24_p6, %s28_s17), %s27_s16 }
  0x16   : > { %p215_p7 = scmp.lt.s32.totalorder %s333_s17, 0  ;;  %s34_s18 = sadd.s32 8, %s333_s17 }
  0x18   : > { %s335_s18 = smov (!%p215_p7, %s34_s18), %s333_s17 }
  0x19   : > { %s36_s19 = scalar_lea.sflag [#allocation3], %s335_s18 }
  0x1a   : > { %270 = dma.done.wait (%p229_p5), %s36_s19, 16 }
  0x1b   : > { %272 = vsyncadd (%p229_p5), %s36_s19, 4294967280  ;;  %s41_s20 = sld [smem:[#allocation5 + %s277_s14]]  ;;  %s55_s24 = scalar_lea.vmem [#allocation2], %s277_s14 }
  0x21   : > { %s54_s23 = scalar_lea.vmem %s330_s1, %s41_s20 }
  0x22   : > { %v74_v0 = vld [vmem:[%s54_s23] sm:$0x1] }
  0x23   : > { %75 = vst [vmem:[%s55_s24] sm:$0x1] %v74_v0 }
  0x24   : > { %100 = vsyncadd %s36_s19, 16  ;;  %s19_s14 = sadd.s32 1, %s277_s14  }
  0x25   : > { %p16_p8 = scmp.ge.s32.totalorder %s19_s14, 64  }
  0x26   :  { %s279_s25 = smov (%p16_p8), 0  }
  0x27   :  { %18 = sbr.rel (!%p16_p8) target bundleno = 16 (0x10), region = 90 }
  0x2e LB: > { %s107_s26 = scalar_lea.sflag [#allocation3], %s281_s25  ;;  %s281_s25 = sphi %s279_s25, %s106_s25  }
  0x2f   : > { %273 = dma.done.wait %s107_s26, 16 }
  0x30   : > { %274 = vsyncadd %s107_s26, 4294967280  ;;  %s106_s25 = sadd.s32 1, %s281_s25  }
  0x31   : > { %p103_p9 = scmp.ge.s32.totalorder %s106_s25, 8  }
  0x32   :  { %v111_v1 = vld [vmem:[#allocation2] sm:$0xff] (%p103_p9)  ;;  %vm119_vm0 = vcmask (%p103_p9), 261120   ;;  %v112_v2 = vld [vmem:[#allocation2 + $0x8] sm:$0xff] (%p103_p9)  ;;  %v113_v3 = vld [vmem:[#allocation2 + $0x10] sm:$0xff] (%p103_p9) }
  0x33   :  { %105 = sbr.rel (!%p103_p9) target bundleno = 46 (0x2e), region = 101  ;;  %120 = vst.msk [vmem:[%s331_s2] sm:$0xff] (%p103_p9), %vm119_vm0, %v111_v1  ;;  %121 = vst.msk [vmem:[%s331_s2 + $0x8] sm:$0xff] (%p103_p9), %vm119_vm0, %v112_v2  ;;  %v114_v4 = vld [vmem:[#allocation2 + $0x18] sm:$0xff] (%p103_p9)  ;;  %v115_v5 = vld [vmem:[#allocation2 + $0x20] sm:$0xff] (%p103_p9) }
  0x34   :  { %122 = vst.msk [vmem:[%s331_s2 + $0x10] sm:$0xff] (%p103_p9), %vm119_vm0, %v113_v3  ;;  %v116_v6 = vld [vmem:[#allocation2 + $0x28] sm:$0xff] (%p103_p9)  ;;  %123 = vst.msk [vmem:[%s331_s2 + $0x18] sm:$0xff] (%p103_p9), %vm119_vm0, %v114_v4  ;;  %v117_v7 = vld [vmem:[#allocation2 + $0x30] sm:$0xff] (%p103_p9) }
  0x35   :  { %124 = vst.msk [vmem:[%s331_s2 + $0x20] sm:$0xff] (%p103_p9), %vm119_vm0, %v115_v5  ;;  %125 = vst.msk [vmem:[%s331_s2 + $0x28] sm:$0xff] (%p103_p9), %vm119_vm0, %v116_v6  ;;  %v118_v8 = vld [vmem:[#allocation2 + $0x38] sm:$0xff] (%p103_p9) }
  0x36   :  { %126 = vst.msk [vmem:[%s331_s2 + $0x30] sm:$0xff] (%p103_p9), %vm119_vm0, %v117_v7  ;;  %127 = vst.msk [vmem:[%s331_s2 + $0x38] sm:$0xff] (%p103_p9), %vm119_vm0, %v118_v8 }
  0x3a   :  { %132 = vsyncmov [#allocation3] }
  0x3d   :  { %s133_s14 = vpop.sfrf %132 }
  0x3e   :  { %p219_p10 = scmp.ne.s32.totalorder %s133_s14, 0 }
  0x40   :  { %137 = shalt.err (%p219_p10)  }
  0x41   :  { %139 = vsyncmov [#allocation3 + $0x1] }
  0x44   :  { %s140_s0 = vpop.sfrf %139 }
  0x45   :  { %p220_p11 = scmp.ne.s32.totalorder %s140_s0, 0 }
  0x47   :  { %144 = shalt.err (%p220_p11)  }
  0x48   :  { %146 = vsyncmov [#allocation3 + $0x2] }
  0x4b   :  { %s147_s15 = vpop.sfrf %146 }
  0x4c   :  { %p221_p12 = scmp.ne.s32.totalorder %s147_s15, 0 }
  0x4e   :  { %151 = shalt.err (%p221_p12)  }
  0x4f   :  { %153 = vsyncmov [#allocation3 + $0x3] }
  0x52   :  { %s154_s16 = vpop.sfrf %153 }
  0x53   :  { %p222_p13 = scmp.ne.s32.totalorder %s154_s16, 0 }
  0x55   :  { %158 = shalt.err (%p222_p13)  }
  0x56   :  { %160 = vsyncmov [#allocation3 + $0x4] }
  0x59   :  { %s161_s17 = vpop.sfrf %160 }
  0x5a   :  { %p223_p0 = scmp.ne.s32.totalorder %s161_s17, 0 }
  0x5c   :  { %165 = shalt.err (%p223_p0)  }
  0x5d   :  { %167 = vsyncmov [#allocation3 + $0x5] }
  0x60   :  { %s168_s2 = vpop.sfrf %167 }
  0x61   :  { %p224_p1 = scmp.ne.s32.totalorder %s168_s2, 0 }
  0x63   :  { %172 = shalt.err (%p224_p1)  }
  0x64   :  { %174 = vsyncmov [#allocation3 + $0x6] }
  0x67   :  { %s175_s18 = vpop.sfrf %174 }
  0x68   :  { %p225_p2 = scmp.ne.s32.totalorder %s175_s18, 0 }
  0x6a   :  { %179 = shalt.err (%p225_p2)  }
  0x6b   :  { %181 = vsyncmov [#allocation3 + $0x7] }
  0x6e   :  { %s182_s19 = vpop.sfrf %181 }
  0x6f   :  { %p226_p3 = scmp.ne.s32.totalorder %s182_s19, 0 }
  0x71   :  { %186 = shalt.err (%p226_p3)  }

</bundles_post_ra>
